<compile_context>
chip_gen: v6e
topology: v6e:2x2x1
jax: 0.10.0
libtpu: 0.0.40
codegen_flags: <defaults>
</compile_context>

<pallas_src>
import functools
import math

import jax
import jax.numpy as jnp
from jax.experimental import pallas as pl
from jax.experimental.pallas import tpu as pltpu

_LANE = 128
_MIB = 1024 * 1024


# ----------------------------------------------------------------------------
# Kernels
# ----------------------------------------------------------------------------
def _finish(x, mean, mean_x2, g_ref, b_ref, o_ref, eps):
    # Matches the PyTorch module exactly: var = E[x^2] - E[x]^2.
    var = mean_x2 - mean * mean
    x_norm = (x - mean) * jax.lax.rsqrt(var + eps)
    out = g_ref[...].astype(jnp.float32) * x_norm + b_ref[...].astype(jnp.float32)
    o_ref[...] = out.astype(o_ref.dtype)


def _ln_kernel_plain(x_ref, g_ref, b_ref, o_ref, *, eps, feat):
    """lane == feat: plain per-row reduction over the lane axis (XLU)."""
    x = x_ref[...].astype(jnp.float32)
    inv_f = jnp.float32(1.0 / feat)
    mean = jnp.sum(x, axis=-1, keepdims=True) * inv_f
    mean_x2 = jnp.sum(x * x, axis=-1, keepdims=True) * inv_f
    _finish(x, mean, mean_x2, g_ref, b_ref, o_ref, eps)


def _ln_kernel_folded(x_ref, g_ref, b_ref, seg_ref, o_ref, *, eps, feat):
    """lane == 128 == n_seg * feat: each 128-lane row holds n_seg logical rows.

    Segmented per-row sums via one MXU matmul per statistic against a constant
    block-diagonal all-ones matrix; the result is already broadcast across each
    segment's lanes.  precision=HIGHEST keeps f32 accuracy (S is exactly 0/1).
    The matmuls hide under the tile DMA, keeping the path HBM-bound.
    """
    x = x_ref[...].astype(jnp.float32)
    seg = seg_ref[...]
    inv_f = jnp.float32(1.0 / feat)
    hi = jax.lax.Precision.HIGHEST
    s1 = jnp.dot(x, seg, preferred_element_type=jnp.float32, precision=hi)
    s2 = jnp.dot(x * x, seg, preferred_element_type=jnp.float32, precision=hi)
    _finish(x, s1 * inv_f, s2 * inv_f, g_ref, b_ref, o_ref, eps)


# ----------------------------------------------------------------------------
# Hardware-aware sizing helpers
# ----------------------------------------------------------------------------
def _vmem_capacity_bytes():
    try:
        info = pltpu.get_tpu_info()
        for name in ("vmem_capacity_bytes", "vmem_size_bytes", "vmem_bytes"):
            v = getattr(info, name, None)
            if v:
                return int(v)
    except Exception:
        pass
    return 64 * _MIB  # conservative: smallest per-TensorCore VMEM (v7x)


def _has_two_tensorcores():
    try:
        kind = jax.devices()[0].device_kind.lower()
        return any(tag in kind for tag in ("v7", "7x", "v4", "v5p"))
    except Exception:
        return False


def _choose_block_rows(n_rows, lane, itemsize, sublane, budget, two_tc):
    def up(v):
        return -(-v // sublane) * sublane

    # VMEM live bytes per kernel row: double-buffered input + output blocks
    # (x dtype) plus ~24 B/elem of f32 temporaries (x, x*x, s1, s2, x_norm).
    per_row = lane * (4 * itemsize + 24)
    cap = (budget // max(per_row, 1)) // sublane * sublane
    cap = max(sublane, min(cap, 4096))

    if two_tc:
        # Megacore: aim for >= 8 grid steps (>= 4 per TensorCore) while tiles
        # stay >= 512 rows; otherwise fall back to an even 2-way split so both
        # cores get one step each.
        tgt = up(pl.cdiv(n_rows, 8))
        if tgt >= 512:
            return min(cap, tgt)
        if n_rows > sublane:
            return min(cap, up(pl.cdiv(n_rows, 2)))
        return sublane

    # Single TensorCore: biggest tile that fits the budget; the grid splits
    # naturally once n_rows exceeds the cap.  No forced splitting of problems
    # that fit in one tile (saves the ~0.35 us per-step overhead on v5e/v6e).
    return min(cap, up(max(n_rows, 1)))


# ----------------------------------------------------------------------------
# Wrapper
# ----------------------------------------------------------------------------
def layer_norm(x, gain, bias, normalized_shape, *, eps=1e-5, block_rows=None):
    """LayerNorm over the trailing `normalized_shape` dims of x."""
    if isinstance(normalized_shape, int):
        normalized_shape = (normalized_shape,)
    normalized_shape = tuple(normalized_shape)
    n_norm = len(normalized_shape)
    assert tuple(x.shape[-n_norm:]) == normalized_shape

    feat = math.prod(normalized_shape)
    rows = math.prod(x.shape[:-n_norm])

    # elementwise_affine=False -> identity scale / zero shift.
    if gain is None:
        gain = jnp.ones(normalized_shape, dtype=x.dtype)
    if bias is None:
        bias = jnp.zeros(normalized_shape, dtype=x.dtype)

    x2d = x.reshape(rows, feat)
    g1 = gain.reshape(1, feat)
    b1 = bias.reshape(1, feat)

    # Lane-dense folding: pack n_seg logical rows per 128-lane kernel row when
    # feat divides 128.  Requires rows % n_seg == 0; otherwise fall back to the
    # plain layout (never pad: padding would add a full extra HBM round trip).
    # TODO(synk): lane-pad non-divisor feats (48, 96, 192, ...) with zero
    # columns in the segment matrix to keep stores full-lane in those cases.
    n_seg = 1
    if feat < _LANE and _LANE % feat == 0 and rows % (_LANE // feat) == 0:
        n_seg = _LANE // feat
    lane = feat * n_seg
    k_rows = rows // n_seg

    itemsize = x.dtype.itemsize
    sublane = {4: 8, 2: 16, 1: 32}.get(itemsize, 8)

    two_tc = _has_two_tensorcores()
    phys_vmem = _vmem_capacity_bytes()
    if phys_vmem <= 64 * _MIB:            # v7x-class: 64 MiB per TensorCore
        budget, limit_cap = 28 * _MIB, 48 * _MIB
    else:                                  # v5e / v6e: 128 MiB physical
        budget, limit_cap = 56 * _MIB, 96 * _MIB

    if block_rows is None:
        block_rows = _choose_block_rows(k_rows, lane, itemsize, sublane, budget, two_tc)
    else:
        block_rows = -(-max(1, int(block_rows)) // sublane) * sublane
    if block_rows >= k_rows:
        # Single full block; "equals the full array dim" satisfies the (8,128)
        # rule even when k_rows is not sublane-aligned.
        block_rows = k_rows
    # Partial last block is handled by Pallas: OOB reads are garbage rows whose
    # per-row statistics never touch valid rows, and OOB writes are masked.
    grid_rows = pl.cdiv(k_rows, block_rows)

    xk = x2d.reshape(k_rows, lane)         # contiguous reshape: no copy
    gk = jnp.tile(g1, (1, n_seg)) if n_seg > 1 else g1
    bk = jnp.tile(b1, (1, n_seg)) if n_seg > 1 else b1

    per_row = lane * (4 * itemsize + 24)
    est = block_rows * per_row + 4 * lane * itemsize + 2 * _MIB
    if n_seg > 1:
        est += _LANE * _LANE * 4
    vmem_limit = int(min(limit_cap, max(est, 16 * _MIB)))

    row_spec = pl.BlockSpec((block_rows, lane), lambda i: (i, 0))
    vec_spec = pl.BlockSpec((1, lane), lambda i: (0, 0))

    if n_seg > 1:
        # Constant block-diagonal all-ones matrix for the segmented MXU sums.
        ids = jnp.arange(_LANE, dtype=jnp.int32) // feat
        seg_mat = (ids[:, None] == ids[None, :]).astype(jnp.float32)
        kernel = functools.partial(_ln_kernel_folded, eps=eps, feat=feat)
        in_specs = [row_spec, vec_spec, vec_spec,
                    pl.BlockSpec((_LANE, _LANE), lambda i: (0, 0))]
        operands = (xk, gk, bk, seg_mat)
    else:
        kernel = functools.partial(_ln_kernel_plain, eps=eps, feat=feat)
        in_specs = [row_spec, vec_spec, vec_spec]
        operands = (xk, gk, bk)

    outk = pl.pallas_call(
        kernel,
        out_shape=jax.ShapeDtypeStruct((k_rows, lane), x.dtype),
        grid_spec=pltpu.PrefetchScalarGridSpec(
            num_scalar_prefetch=0,
            grid=(grid_rows,),
            in_specs=in_specs,
            out_specs=row_spec,
        ),
        compiler_params=pltpu.CompilerParams(
            dimension_semantics=("parallel",),
            vmem_limit_bytes=vmem_limit,
        ),
    )(*operands)

    return outk.reshape(x.shape)


# ----------------------------------------------------------------------------
# Reference + demo
# ----------------------------------------------------------------------------
def _reference(x, gain, bias, eps, n_norm):
    dims = tuple(range(x.ndim - n_norm, x.ndim))
    mean = jnp.mean(x, axis=dims, keepdims=True)
    mean_x2 = jnp.mean(x * x, axis=dims, keepdims=True)
    var = mean_x2 - mean * mean
    x_norm = (x - mean) / jnp.sqrt(var + eps)
    return gain * x_norm + bias


if __name__ == "__main__":
    eps = 1e-5
    key = jax.random.PRNGKey(0)
    k1, k2, k3, k4, k5, k6 = jax.random.split(key, 6)

    # Case 1 (module docstring NLP case): [seq_len, batch, features],
    # normalized_shape=(features,).  feat=32 exercises the MXU lane-dense fold.
    seq_len, batch, features = 8, 2, 32
    x1 = jax.random.normal(k1, (seq_len, batch, features), dtype=jnp.float32)
    gain1 = jnp.ones((features,), dtype=jnp.float32)   # nn.Parameter(ones)
    bias1 = jnp.zeros((features,), dtype=jnp.float32)  # nn.Parameter(zeros)
    out1 = jax.block_until_ready(layer_norm(x1, gain1, bias1, (features,), eps=eps))
    ref1 = _reference(x1, gain1, bias1, eps, 1)
    assert jnp.allclose(out1, ref1, atol=1e-5, rtol=1e-5)

    # Case 2: lane-multiple feature size -> plain (unfolded) path, single tile.
    x2 = jax.random.normal(k2, (4, 3, 256), dtype=jnp.float32)
    gain2 = 1.0 + 0.1 * jax.random.normal(k3, (256,), dtype=jnp.float32)
    bias2 = 0.1 * jax.random.normal(k4, (256,), dtype=jnp.float32)
    out2 = jax.block_until_ready(layer_norm(x2, gain2, bias2, 256, eps=eps))
    ref2 = _reference(x2, gain2, bias2, eps, 1)
    assert jnp.allclose(out2, ref2, atol=1e-5, rtol=1e-5)

    # Case 3: folded path with a forced small tile -> multi-step grid with a
    # partial (OOB-masked) last block, i.e. the no-padding path.
    x3 = jax.random.normal(k5, (10, 3, 64), dtype=jnp.float32)
    gain3 = 1.0 + 0.1 * jax.random.normal(k6, (64,), dtype=jnp.float32)
    bias3 = jnp.zeros((64,), dtype=jnp.float32)
    out3 = jax.block_until_ready(
        layer_norm(x3, gain3, bias3, (64,), eps=eps, block_rows=8))
    ref3 = _reference(x3, gain3, bias3, eps, 1)
    assert jnp.allclose(out3, ref3, atol=1e-5, rtol=1e-5)

    # Case 4: rows not a multiple of the fold factor -> fold disabled (no pad).
    x4 = jax.random.normal(k1, (5, 2, 32), dtype=jnp.float32)
    out4 = jax.block_until_ready(layer_norm(x4, gain1, bias1, (32,), eps=eps))
    ref4 = _reference(x4, gain1, bias1, eps, 1)
    assert jnp.allclose(out4, ref4, atol=1e-5, rtol=1e-5)

    print("KERNEL_OK")
</pallas_src>

<mosaic_0001>
module attributes {stable_mosaic.version = 11 : i64} {
  func.func @_ln_kernel_folded(%arg0: i32, %arg1: memref<4x128xf32, #tpu.memory_space<vmem>>, %arg2: memref<1x128xf32, #tpu.memory_space<vmem>>, %arg3: memref<1x128xf32, #tpu.memory_space<vmem>>, %arg4: memref<128x128xf32, #tpu.memory_space<vmem>>, %arg5: memref<4x128xf32, #tpu.memory_space<vmem>>) attributes {dimension_semantics = [#tpu.dimension_semantics<parallel>], iteration_bounds = array<i64: 1>, scalar_prefetch = 0 : i64, scratch_operands = 0 : i64, tpu.core_type = #tpu.core_type<tc>, window_params = [{transform_indices = @transform_0, window_bounds = array<i64: 4, 128>}, {pipeline_mode = #tpu.pipeline_mode<synchronous>, transform_indices = @transform_1, window_bounds = array<i64: 1, 128>}, {pipeline_mode = #tpu.pipeline_mode<synchronous>, transform_indices = @transform_2, window_bounds = array<i64: 1, 128>}, {pipeline_mode = #tpu.pipeline_mode<synchronous>, transform_indices = @transform_3, window_bounds = array<i64: 128, 128>}, {transform_indices = @transform_4, window_bounds = array<i64: 4, 128>}]} {
    %c0 = arith.constant 0 : index
    %c0_0 = arith.constant 0 : index
    %0 = vector.load %arg1[%c0, %c0_0] : memref<4x128xf32, #tpu.memory_space<vmem>>, vector<4x128xf32>
    %c0_1 = arith.constant 0 : index
    %c0_2 = arith.constant 0 : index
    %1 = vector.load %arg4[%c0_1, %c0_2] : memref<128x128xf32, #tpu.memory_space<vmem>>, vector<128x128xf32>
    %cst = arith.constant dense<0.000000e+00> : vector<4x128xf32>
    %2 = tpu.matmul %0, %1, %cst {dimension_numbers = #tpu.dot_dimension_numbers<[1], [0], [0], [1], [0, 0, 1, 1], [], []>, precision = #tpu.contract_precision<fp32>} : vector<4x128xf32>, vector<128x128xf32>, vector<4x128xf32> -> vector<4x128xf32>
    %3 = arith.mulf %0, %0 : vector<4x128xf32>
    %cst_3 = arith.constant dense<0.000000e+00> : vector<4x128xf32>
    %4 = tpu.matmul %3, %1, %cst_3 {dimension_numbers = #tpu.dot_dimension_numbers<[1], [0], [0], [1], [0, 0, 1, 1], [], []>, precision = #tpu.contract_precision<fp32>} : vector<4x128xf32>, vector<128x128xf32>, vector<4x128xf32> -> vector<4x128xf32>
    %cst_4 = arith.constant 3.125000e-02 : f32
    %5 = vector.broadcast %cst_4 : f32 to vector<4x128xf32>
    %6 = arith.mulf %2, %5 : vector<4x128xf32>
    %cst_5 = arith.constant 3.125000e-02 : f32
    %7 = vector.broadcast %cst_5 : f32 to vector<4x128xf32>
    %8 = arith.mulf %4, %7 : vector<4x128xf32>
    %9 = arith.mulf %6, %6 : vector<4x128xf32>
    %10 = arith.subf %8, %9 : vector<4x128xf32>
    %11 = arith.subf %0, %6 : vector<4x128xf32>
    %cst_6 = arith.constant 9.99999974E-6 : f32
    %12 = vector.broadcast %cst_6 : f32 to vector<4x128xf32>
    %13 = arith.addf %10, %12 : vector<4x128xf32>
    %14 = math.rsqrt %13 : vector<4x128xf32>
    %15 = arith.mulf %11, %14 : vector<4x128xf32>
    %c0_7 = arith.constant 0 : index
    %c0_8 = arith.constant 0 : index
    %16 = vector.load %arg2[%c0_7, %c0_8] : memref<1x128xf32, #tpu.memory_space<vmem>>, vector<1x128xf32>
    %17 = vector.broadcast %16 : vector<1x128xf32> to vector<4x128xf32>
    %18 = arith.mulf %17, %15 : vector<4x128xf32>
    %c0_9 = arith.constant 0 : index
    %c0_10 = arith.constant 0 : index
    %19 = vector.load %arg3[%c0_9, %c0_10] : memref<1x128xf32, #tpu.memory_space<vmem>>, vector<1x128xf32>
    %20 = vector.broadcast %19 : vector<1x128xf32> to vector<4x128xf32>
    %21 = arith.addf %18, %20 : vector<4x128xf32>
    %c0_11 = arith.constant 0 : index
    %c0_12 = arith.constant 0 : index
    %22 = vector.load %arg5[%c0_11, %c0_12] : memref<4x128xf32, #tpu.memory_space<vmem>>, vector<4x128xf32>
    tpu.vector_store %arg5[%c0_11, %c0_12], %21 {strides = array<i32>} : memref<4x128xf32, #tpu.memory_space<vmem>>, vector<4x128xf32>,
    return
  }
  func.func @transform_0(%arg0: i32) -> (i32, i32) {
    %c0_i32 = arith.constant 0 : i32
    %c0_i32_0 = arith.constant 0 : i32
    return %arg0, %c0_i32 : i32, i32
  }
  func.func @transform_1(%arg0: i32) -> (i32, i32) {
    %c0_i32 = arith.constant 0 : i32
    %c0_i32_0 = arith.constant 0 : i32
    %c0_i32_1 = arith.constant 0 : i32
    return %c0_i32, %c0_i32_0 : i32, i32
  }
  func.func @transform_2(%arg0: i32) -> (i32, i32) {
    %c0_i32 = arith.constant 0 : i32
    %c0_i32_0 = arith.constant 0 : i32
    %c0_i32_1 = arith.constant 0 : i32
    return %c0_i32, %c0_i32_0 : i32, i32
  }
  func.func @transform_3(%arg0: i32) -> (i32, i32) {
    %c0_i32 = arith.constant 0 : i32
    %c0_i32_0 = arith.constant 0 : i32
    %c0_i32_1 = arith.constant 0 : i32
    return %c0_i32, %c0_i32_0 : i32, i32
  }
  func.func @transform_4(%arg0: i32) -> (i32, i32) {
    %c0_i32 = arith.constant 0 : i32
    %c0_i32_0 = arith.constant 0 : i32
    return %arg0, %c0_i32 : i32, i32
  }
}

</mosaic_0001>

<bundles_post_ra>
// kernel: tpu_custom_call.1
= control target key start
LH: loop header
LB: loop body
LE: loop exit
PB: predicated region body
PF: predicated region fallthrough
CT: control target
= control target key end

     0   :  { %9 = vsyncpa [#allocation3], 0  ;;  %s2770_s0 = inlined_call_operand.hbm [shape: f32[4,128], index: 0, kind: input, shape index: {}]   ;;  %s2771_s1 = inlined_call_operand.vmem [shape: f32[1,128], index: 1, kind: input, shape index: {}]   ;;  %s2772_s2 = inlined_call_operand.vmem [shape: f32[1,128], index: 2, kind: input, shape index: {}]   ;;  %s2773_s3 = inlined_call_operand.hbm [shape: f32[128,128], index: 3, kind: input, shape index: {}]   ;;  %s2774_s4 = inlined_call_operand.hbm [shape: f32[4,128], index: 4, kind: output, shape index: {}]  }
   0x1   :  { %10 = vsyncpa [#allocation6], 0 }
   0x2   :  { %11 = vsyncpa [#allocation4], 0  ;;  %s2086_s15 = smov [#allocation2]   ;;  %s2087_s17 = smov [#allocation5]  }
   0x3   :  { %s18_s16 = sshll.u32 %s2086_s15, 4  ;;  %s31_s18 = sshll.u32 %s2087_s17, 4  ;;  %s19_s16 = int_to_ptr.vmem [resolvable:$true] %s18_s16  ;;  %s32_s18 = int_to_ptr.vmem [resolvable:$true] %s31_s18 }
   0x4   :  { %s2028_s19 = scalar_lea.vmem %s19_s16, 64  ;;  %p2033_p1 = scmp.lt.s32.totalorder %s19_s16, %s19_s16 }
   0x5   :  { %p2029_p0 = scmp.ne.s32.totalorder %s19_s16, %s2028_s19  ;;  %p2034_p2 = scmp.lt.s32.totalorder %s2028_s19, %s2028_s19 }
   0x7   :  { %p2035_p3 = por %p2034_p2, %p2033_p1 }
   0x9   :  { %p2036_p4 = pnand %p2035_p3, %p2029_p0 }
   0xb   :  { %2039 = shalt.err (!%p2036_p4)
}
   0xc   :  { %21 = dma.hbm_to_vmem [thread:$0]  %s2770_s0, 64, %s19_s16, [#allocation3]  }
   0xd   :  { %s2048_s22 = scalar_lea.vmem %s32_s18, 2048  ;;  %p2053_p6 = scmp.lt.s32.totalorder %s32_s18, %s32_s18 }
   0xe   :  { %p2049_p5 = scmp.ne.s32.totalorder %s32_s18, %s2048_s22  ;;  %p2054_p7 = scmp.lt.s32.totalorder %s2048_s22, %s2048_s22 }
  0x10   :  { %p2055_p8 = por %p2054_p7, %p2053_p6 }
  0x12   :  { %p2056_p9 = pnand %p2055_p8, %p2049_p5 }
  0x14   :  { %2059 = shalt.err (!%p2056_p9)
}
  0x15   :  { %s2088_s23 = smov 128   ;;  %s2089_s24 = smov 8  }
  0x16   :  { %37 = dma.hbm_to_vmem [thread:$0]  %s2773_s3, 2048, %s32_s18, [#allocation6], %s2088_s23, %s2088_s23, %s2089_s24  }
  0x17   :  { %2080 = dma.done.wait [#allocation3], 64  }
  0x18   :  { %2081 = vsyncadd [#allocation3], 4294967232 }
  0x19   :  { %2082 = dma.done.wait [#allocation6], 2048  }
  0x1a   :  { %2083 = vsyncadd [#allocation6], 4294965248  ;;  %v2090_v0 = vmov 0.0   ;;  %vm2091_vm0 = vmmov 0   ;;  %v60_v1 = vld [vmem:[#allocation5 + $0x78] sm:$0xff]  ;;  %v59_v2 = vld [vmem:[#allocation5 + $0x70] sm:$0xff] }
  0x1b   :  { %1591 = vmatprep.subr.mxu0 %v2090_v0  ;;  %1626 = vmatprep.subr.mxu1 %v2090_v0  ;;  %v58_v3 = vld [vmem:[#allocation5 + $0x68] sm:$0xff]  ;;  %v2130_v4 = vand.u32 4294901760, %v60_v1  ;;  %v2132_v5 = vand.u32 4294901760, %v59_v2  ;;  %v57_v7 = vld [vmem:[#allocation5 + $0x60] sm:$0xff]  ;;  %v56_v8 = vld [vmem:[#allocation5 + $0x58] sm:$0xff]  ;;  %s2092_s29 = smov [#allocation7]  }
  0x1c   :  { %1623 = vmatprep.mubr.msk.f32.mxu0 %vm2091_vm0, %v2090_v0  ;;  %1658 = vmatprep.mubr.msk.f32.mxu1 %vm2091_vm0, %v2090_v0  ;;  %v2134_v6 = vand.u32 4294901760, %v58_v3  ;;  %v55_v9 = vld [vmem:[#allocation5 + $0x50] sm:$0xff]  ;;  %v2136_v10 = vand.u32 4294901760, %v57_v7  ;;  %v2138_v11 = vand.u32 4294901760, %v56_v8  ;;  %v54_v13 = vld [vmem:[#allocation5 + $0x48] sm:$0xff]  ;;  %v53_v14 = vld [vmem:[#allocation5 + $0x40] sm:$0xff] }
  0x1d   :  { %v2140_v12 = vand.u32 4294901760, %v55_v9  ;;  %1592 = vmatpush3.msra.mxu0 %v2130_v4  ;;  %v2144_v15 = vsub.f32 %v60_v1, %v2130_v4  ;;  %v2147_v16 = vsub.f32 %v59_v2, %v2132_v5  ;;  %v2149_v17 = vand.u32 4294901760, %v54_v13  ;;  %v52_v19 = vld [vmem:[#allocation5 + $0x38] sm:$0xff]  ;;  %v51_v26 = vld [vmem:[#allocation5 + $0x30] sm:$0xff]  ;;  %v50_v36 = vld [vmem:[#allocation5 + $0x28] sm:$0xff]  ;;  %s1375_s30 = sshll.u32 %s2092_s29, 4  ;;  %s1376_s30 = int_to_ptr.vmem [resolvable:$true] %s1375_s30 }
  0x1e   :  { %v2152_v18 = vsub.f32 %v58_v3, %v2134_v6  ;;  %1593 = vmatprep.subr.mxu0 %v2090_v0  ;;  %v2156_v20 = vsub.f32 %v57_v7, %v2136_v10  ;;  %v2159_v21 = vsub.f32 %v56_v8, %v2138_v11  ;;  %v2171_v25 = vand.u32 4294901760, %v53_v14  ;;  %v49_v41 = vld [vmem:[#allocation5 + $0x20] sm:$0xff]  ;;  %v48_v49 = vld [vmem:[#allocation5 + $0x18] sm:$0xff]  ;;  %v47_v54 = vld [vmem:[#allocation5 + $0x10] sm:$0xff]  ;;  %s2060_s5 = scalar_lea.vmem %s1376_s30, 64  ;;  %p2065_p11 = scmp.lt.s32.totalorder %s1376_s30, %s1376_s30 }
  0x1f   :  { %1594 = vmatpush3.msra.mxu0 %v2132_v5  ;;  %v2163_v22 = vand.u32 4294901760, %v2144_v15  ;;  %v2166_v23 = vand.u32 4294901760, %v2147_v16  ;;  %v2177_v28 = vand.u32 4294901760, %v52_v19  ;;  %v2183_v30 = vsub.f32 %v55_v9, %v2140_v12  ;;  %v2230_v50 = vld [vmem:[#allocation2] sm:$0xf]  ;;  %v46_v60 = vld [vmem:[#allocation5 + $0x8] sm:$0xff]  ;;  %p2061_p10 = scmp.ne.s32.totalorder %s1376_s30, %s2060_s5  ;;  %p2066_p12 = scmp.lt.s32.totalorder %s2060_s5, %s2060_s5 }
  0x20   :  { %v2169_v24 = vand.u32 4294901760, %v2152_v18  ;;  %1595 = vmatprep.subr.mxu0 %v2090_v0  ;;  %v2175_v27 = vand.u32 4294901760, %v2156_v20  ;;  %v2180_v29 = vand.u32 4294901760, %v2159_v21  ;;  %v2193_v34 = vsub.f32 %v54_v13, %v2149_v17  ;;  %v45_v7 = vld [vmem:[#allocation5] sm:$0xff] }
  0x21   :  { %1596 = vmatpush3.msra.mxu0 %v2134_v6  ;;  %v156_v31 = vsub.f32 %v2144_v15, %v2163_v22  ;;  %v163_v32 = vsub.f32 %v2147_v16, %v2166_v23  ;;  %v2196_v35 = vand.u32 4294901760, %v51_v26  ;;  %v2206_v40 = vand.u32 4294901760, %v2183_v30  ;;  %p2067_p13 = por %p2066_p12, %p2065_p11 }
  0x22   :  { %v170_v33 = vsub.f32 %v2152_v18, %v2169_v24  ;;  %1597 = vmatprep.subr.mxu0 %v2090_v0  ;;  %v177_v39 = vsub.f32 %v2156_v20, %v2175_v27  ;;  %v184_v42 = vsub.f32 %v2159_v21, %v2180_v29  ;;  %v2212_v43 = vsub.f32 %v53_v14, %v2171_v25 }
  0x23   :  { %1598 = vmatpush3.msra.mxu0 %v2136_v10  ;;  %v2199_v37 = vand.u32 4294901760, %v156_v31  ;;  %v2201_v38 = vand.u32 4294901760, %v163_v32  ;;  %v2218_v45 = vand.u32 4294901760, %v50_v36  ;;  %v2221_v46 = vand.u32 4294901760, %v2193_v34  ;;  %p2068_p0 = pnand %p2067_p13, %p2061_p10 }
  0x24   :  { %1599 = vmatprep.subr.mxu0 %v2090_v0  ;;  %v2216_v44 = vand.u32 4294901760, %v170_v33  ;;  %v2224_v47 = vsub.f32 %v52_v19, %v2177_v28  ;;  %v2228_v48 = vand.u32 4294901760, %v49_v41  ;;  %v2234_v51 = vand.u32 4294901760, %v177_v39 }
  0x25   :  { %1600 = vmatpush3.msra.mxu0 %v2138_v11  ;;  %1627 = vmatpush3.msra.mxu1 %v2199_v37  ;;  %v191_v52 = vsub.f32 %v2183_v30, %v2206_v40  ;;  %v2239_v53 = vand.u32 4294901760, %v2212_v43  ;;  %v2242_v55 = vsub.f32 %v51_v26, %v2196_v35  ;;  %v2246_v56 = vand.u32 4294901760, %v184_v42 }
  0x26   :  { %2783 = vst [vmem:[#allocation11_spill] sm:$0xff] %v2216_v44  ;;  %1601 = vmatprep.subr.mxu0 %v2090_v0  ;;  %1628 = vmatprep.subr.mxu1 %v2090_v0  ;;  %2784 = vst [vmem:[#allocation12_spill] sm:$0xff] %v2234_v51  ;;  %v2249_v57 = vand.u32 4294901760, %v2224_v47  ;;  %v198_v58 = vsub.f32 %v2193_v34, %v2221_v46  ;;  %v2255_v59 = vand.u32 4294901760, %v48_v49  ;;  %v2261_v62 = vand.u32 4294901760, %v2230_v50 }
  0x27   :  { %1602 = vmatpush3.msra.mxu0 %v2140_v12  ;;  %1629 = vmatpush3.msra.mxu1 %v2201_v38  ;;  %2785 = vst [vmem:[#allocation13_spill] sm:$0xff] %v2246_v56  ;;  %v2258_v61 = vsub.f32 %v50_v36, %v2218_v45  ;;  %v2265_v63 = vand.u32 4294901760, %v47_v54  ;;  %v2269_v1 = vand.u32 4294901760, %v191_v52  ;;  %v205_v2 = vsub.f32 %v2212_v43, %v2239_v53 }
  0x28   :  { %1603 = vmatprep.subr.mxu0 %v2090_v0  ;;  %1630 = vmatprep.subr.mxu1 %v2090_v0  ;;  %v2274_v3 = vand.u32 4294901760, %v2242_v55  ;;  %v2277_v8 = vsub.f32 %v49_v41, %v2228_v48  ;;  %v212_v9 = vsub.f32 %v2224_v47, %v2249_v57  ;;  %v2283_v13 = vand.u32 4294901760, %v46_v60 }
  0x29   :  { %1604 = vmatpush3.msra.mxu0 %v2149_v17  ;;  %1631 = vmatpush3.msra.mxu1 %v2216_v44  ;;  %2786 = vst [vmem:[#allocation14_spill] sm:$0xff] %v2269_v1  ;;  %v2287_v14 = vand.u32 4294901760, %v198_v58  ;;  %v2290_v19 = vand.u32 4294901760, %v2258_v61  ;;  %v2294_v26 = vsub.f32 %v2230_v50, %v2261_v62  ;;  %v2297_v31 = vsub.f32 %v48_v49, %v2255_v59 }
  0x2a   :  { %1605 = vmatprep.subr.mxu0 %v2090_v0  ;;  %1632 = vmatprep.subr.mxu1 %v2090_v0  ;;  %v2301_v32 = vand.u32 4294901760, %v45_v7  ;;  %v2305_v33 = vand.u32 4294901760, %v205_v2  ;;  %v219_v36 = vsub.f32 %v2242_v55, %v2274_v3  ;;  %v2310_v39 = vand.u32 4294901760, %v2277_v8 }
  0x2b   :  { %1606 = vmatpush3.msra.mxu0 %v2171_v25  ;;  %1633 = vmatpush3.msra.mxu1 %v2234_v51  ;;  %2787 = vst [vmem:[#allocation15_spill] sm:$0xff] %v2287_v14  ;;  %v2313_v41 = vsub.f32 %v47_v54, %v2265_v63  ;;  %v2317_v42 = vand.u32 4294901760, %v212_v9  ;;  %v226_v49 = vsub.f32 %v2258_v61, %v2290_v19  ;;  %v2325_v58 = vand.u32 4294901760, %v2297_v31 }
  0x2c   :  { %1607 = vmatprep.subr.mxu0 %v2090_v0  ;;  %1634 = vmatprep.subr.mxu1 %v2090_v0  ;;  %2788 = vst [vmem:[#allocation16_spill] sm:$0xff] %v2305_v33  ;;  %v2328_v54 = vsub.f32 %v46_v60, %v2283_v13  ;;  %v2334_v2 = vand.u32 4294901760, %v219_v36  ;;  %v233_v9 = vsub.f32 %v2277_v8, %v2310_v39  ;;  %v2791_v36 = vand.u32 4294901760, %v2294_v26 }
  0x2d   :  { %1608 = vmatpush3.msra.mxu0 %v2177_v28  ;;  %1635 = vmatpush3.msra.mxu1 %v2246_v56  ;;  %2789 = vst [vmem:[#allocation17_spill] sm:$0xff] %v2317_v42  ;;  %v2339_v52 = vand.u32 4294901760, %v2313_v41  ;;  %v2348_v60 = vand.u32 4294901760, %v226_v49 }
  0x2e   :  { %1609 = vmatprep.subr.mxu0 %v2090_v0  ;;  %1636 = vmatprep.subr.mxu1 %v2090_v0  ;;  %2790 = vst [vmem:[#allocation18_spill] sm:$0xff] %v2334_v2  ;;  %v2362_v49 = vand.u32 4294901760, %v233_v9 }
  0x2f   :  { %1610 = vmatpush3.msra.mxu0 %v2196_v35  ;;  %1637 = vmatpush3.msra.mxu1 %v2269_v1  ;;  %v240_v1 = vsub.f32 %v2297_v31, %v2325_v58 }
  0x30   :  { %1611 = vmatprep.subr.mxu0 %v2090_v0  ;;  %1638 = vmatprep.subr.mxu1 %v2090_v0 }
  0x31   :  { %1612 = vmatpush3.msra.mxu0 %v2218_v45  ;;  %1639 = vmatpush3.msra.mxu1 %v2287_v14  ;;  %v2342_v14 = vsub.f32 %v45_v7, %v2301_v32  ;;  %v2356_v7 = vand.u32 4294901760, %v2328_v54  ;;  %v2373_v51 = vand.u32 4294901760, %v240_v1 }
  0x32   :  { %1613 = vmatprep.subr.mxu0 %v2090_v0  ;;  %1640 = vmatprep.subr.mxu1 %v2090_v0 }
  0x33   :  { %1614 = vmatpush3.msra.mxu0 %v2228_v48  ;;  %1641 = vmatpush3.msra.mxu1 %v2305_v33  ;;  %v145_v33 = vsub.f32 %v2294_v26, %v2791_v36  ;;  %v2367_v36 = vand.u32 4294901760, %v2342_v14  ;;  %v254_v9 = vsub.f32 %v2328_v54, %v2356_v7 }
  0x34   :  { %1615 = vmatprep.subr.mxu0 %v2090_v0  ;;  %1642 = vmatprep.subr.mxu1 %v2090_v0 }
  0x35   :  { %1616 = vmatpush3.msra.mxu0 %v2255_v59  ;;  %1643 = vmatpush3.msra.mxu1 %v2317_v42  ;;  %v247_v42 = vsub.f32 %v2313_v41, %v2339_v52  ;;  %v146_v56 = vand.u32 4294901760, %v145_v33  ;;  %v261_v44 = vsub.f32 %v2342_v14, %v2367_v36  ;;  %v2388_v1 = vand.u32 4294901760, %v254_v9  ;;  %v2796_v9 = vld [vmem:[#allocation14_spill] sm:$0xff] }
  0x36   :  { %1617 = vmatprep.subr.mxu0 %v2090_v0  ;;  %1644 = vmatprep.subr.mxu1 %v2090_v0 }
  0x37   :  { %1618 = vmatpush3.msra.mxu0 %v2265_v63  ;;  %1645 = vmatpush3.msra.mxu1 %v2334_v2  ;;  %v2381_v2 = vand.u32 4294901760, %v247_v42  ;;  %v2394_v33 = vand.u32 4294901760, %v261_v44  ;;  %v2792_v44 = vand.u32 4294901760, %v2294_v26 }
  0x38   :  { %1619 = vmatprep.subr.mxu0 %v2090_v0  ;;  %1646 = vmatprep.subr.mxu1 %v2090_v0 }
  0x39   :  { %1620 = vmatpush3.msra.mxu0 %v2283_v13  ;;  %1647 = vmatpush3.msra.mxu1 %v2348_v60 }
  0x3a   :  { %1621 = vmatprep.subr.mxu0 %v2090_v0  ;;  %1648 = vmatprep.subr.mxu1 %v2090_v0 }
  0x3b   :  { %1622 = vmatpush3.msra.mxu0 %v2301_v32  ;;  %1649 = vmatpush3.msra.mxu1 %v2362_v49 }
  0x3c   :  { %1650 = vmatprep.subr.mxu1 %v2090_v0  ;;  %1661 = vmatprep.subr.mxu0 %v2090_v0 }
  0x3d   :  { %1624 = vmatmul.mubr.f32.vlgmr.msra.gmra.mxu0 %v146_v56  ;;  %1651 = vmatpush3.msra.mxu1 %v2373_v51  ;;  %v702_v56 = vmul.f32 %v2230_v50, %v2230_v50 }
  0x3e   :  { %1662 = vmatpush3.msra.mxu0 %v2144_v15  ;;  %1652 = vmatprep.subr.mxu1 %v2090_v0 }
  0x3f   :  { %1663 = vmatprep.subr.mxu0 %v2090_v0  ;;  %1653 = vmatpush3.msra.mxu1 %v2381_v2 }
  0x40   :  { %1664 = vmatpush3.msra.mxu0 %v2147_v16  ;;  %1654 = vmatprep.subr.mxu1 %v2090_v0 }
  0x41   :  { %1665 = vmatprep.subr.mxu0 %v2090_v0  ;;  %1655 = vmatpush3.msra.mxu1 %v2388_v1 }
  0x42   :  { %1666 = vmatpush3.msra.mxu0 %v2152_v18  ;;  %1656 = vmatprep.subr.mxu1 %v2090_v0 }
  0x43   :  { %1667 = vmatprep.subr.mxu0 %v2090_v0  ;;  %1657 = vmatpush3.msra.mxu1 %v2394_v33 }
  0x44   :  { %1668 = vmatpush3.msra.mxu0 %v2156_v20  ;;  %1659 = vmatmul.mubr.f32.vlgmr.msra.gmra.mxu1 %v2261_v62 }
  0x45   :  { %1669 = vmatprep.subr.mxu0 %v2090_v0  ;;  %1696 = vmatprep.subr.mxu1 %v2090_v0 }
  0x46   :  { %1670 = vmatpush3.msra.mxu0 %v2159_v21  ;;  %1697 = vmatpush3.msra.mxu1 %v2130_v4 }
  0x47   :  { %1671 = vmatprep.subr.mxu0 %v2090_v0  ;;  %1698 = vmatprep.subr.mxu1 %v2090_v0 }
  0x48   :  { %1672 = vmatpush3.msra.mxu0 %v2183_v30  ;;  %1699 = vmatpush3.msra.mxu1 %v2132_v5 }
  0x49   :  { %1673 = vmatprep.subr.mxu0 %v2090_v0  ;;  %1700 = vmatprep.subr.mxu1 %v2090_v0 }
  0x4a   :  { %1674 = vmatpush3.msra.mxu0 %v2193_v34  ;;  %1701 = vmatpush3.msra.mxu1 %v2134_v6 }
  0x4b   :  { %1675 = vmatprep.subr.mxu0 %v2090_v0  ;;  %1702 = vmatprep.subr.mxu1 %v2090_v0 }
  0x4c   :  { %1676 = vmatpush3.msra.mxu0 %v2212_v43  ;;  %1703 = vmatpush3.msra.mxu1 %v2136_v10 }
  0x4d   :  { %1677 = vmatprep.subr.mxu0 %v2090_v0  ;;  %1704 = vmatprep.subr.mxu1 %v2090_v0 }
  0x4e   :  { %1678 = vmatpush3.msra.mxu0 %v2224_v47  ;;  %1705 = vmatpush3.msra.mxu1 %v2138_v11 }
  0x4f   :  { %1679 = vmatprep.subr.mxu0 %v2090_v0  ;;  %1706 = vmatprep.subr.mxu1 %v2090_v0 }
  0x50   :  { %1680 = vmatpush3.msra.mxu0 %v2242_v55  ;;  %1707 = vmatpush3.msra.mxu1 %v2140_v12 }
  0x51   :  { %1681 = vmatprep.subr.mxu0 %v2090_v0  ;;  %1708 = vmatprep.subr.mxu1 %v2090_v0 }
  0x52   :  { %1682 = vmatpush3.msra.mxu0 %v2258_v61  ;;  %1709 = vmatpush3.msra.mxu1 %v2149_v17 }
  0x53   :  { %1683 = vmatprep.subr.mxu0 %v2090_v0  ;;  %1710 = vmatprep.subr.mxu1 %v2090_v0 }
  0x54   :  { %1684 = vmatpush3.msra.mxu0 %v2277_v8  ;;  %1711 = vmatpush3.msra.mxu1 %v2171_v25 }
  0x55   :  { %1685 = vmatprep.subr.mxu0 %v2090_v0  ;;  %1712 = vmatprep.subr.mxu1 %v2090_v0 }
  0x56   :  { %1686 = vmatpush3.msra.mxu0 %v2297_v31  ;;  %1713 = vmatpush3.msra.mxu1 %v2177_v28 }
  0x57   :  { %1687 = vmatprep.subr.mxu0 %v2090_v0  ;;  %1714 = vmatprep.subr.mxu1 %v2090_v0 }
  0x58   :  { %1688 = vmatpush3.msra.mxu0 %v2313_v41  ;;  %1715 = vmatpush3.msra.mxu1 %v2196_v35 }
  0x59   :  { %1689 = vmatprep.subr.mxu0 %v2090_v0  ;;  %1716 = vmatprep.subr.mxu1 %v2090_v0 }
  0x5a   :  { %1690 = vmatpush3.msra.mxu0 %v2328_v54  ;;  %1717 = vmatpush3.msra.mxu1 %v2218_v45 }
  0x5b   :  { %1691 = vmatprep.subr.mxu0 %v2090_v0  ;;  %1718 = vmatprep.subr.mxu1 %v2090_v0 }
  0x5c   :  { %1692 = vmatpush3.msra.mxu0 %v2342_v14  ;;  %1693 = vmatprep.mubr.msk.f32.mxu0 %vm2091_vm0, %v2090_v0 }
  0x5d   :  { %1719 = vmatpush3.msra.mxu1 %v2228_v48  ;;  %1694 = vmatmul.mubr.f32.vlgmr.msra.gmra.mxu0 %v2294_v26  ;;  %v2794_v26 = vld [vmem:[#allocation12_spill] sm:$0xff] }
  0x5e   :  { %1720 = vmatprep.subr.mxu1 %v2090_v0  ;;  %1731 = vmatprep.subr.mxu0 %v2090_v0 }
  0x5f   :  { %1721 = vmatpush3.msra.mxu1 %v2255_v59  ;;  %1732 = vmatpush3.msra.mxu0 %v2163_v22 }
  0x60   :  { %1722 = vmatprep.subr.mxu1 %v2090_v0  ;;  %1733 = vmatprep.subr.mxu0 %v2090_v0 }
  0x61   :  { %1723 = vmatpush3.msra.mxu1 %v2265_v63  ;;  %1734 = vmatpush3.msra.mxu0 %v2166_v23 }
  0x62   :  { %1724 = vmatprep.subr.mxu1 %v2090_v0  ;;  %1735 = vmatprep.subr.mxu0 %v2090_v0 }
  0x63   :  { %1725 = vmatpush3.msra.mxu1 %v2283_v13  ;;  %1736 = vmatpush3.msra.mxu0 %v2169_v24 }
  0x64   :  { %1726 = vmatprep.subr.mxu1 %v2090_v0  ;;  %1737 = vmatprep.subr.mxu0 %v2090_v0 }
  0x65   :  { %1727 = vmatpush3.msra.mxu1 %v2301_v32  ;;  %1728 = vmatprep.mubr.msk.f32.mxu1 %vm2091_vm0, %v2090_v0 }
  0x66   :  { %1738 = vmatpush3.msra.mxu0 %v2175_v27  ;;  %1729 = vmatmul.mubr.f32.vlgmr.msra.gmra.mxu1 %v2792_v44  ;;  %v2797_v44 = vld [vmem:[#allocation15_spill] sm:$0xff] }
  0x67   :  { %1739 = vmatprep.subr.mxu0 %v2090_v0  ;;  %1766 = vmatprep.subr.mxu1 %v2090_v0 }
  0x68   :  { %1740 = vmatpush3.msra.mxu0 %v2180_v29  ;;  %1767 = vmatpush3.msra.mxu1 %v2130_v4 }
  0x69   :  { %1741 = vmatprep.subr.mxu0 %v2090_v0  ;;  %1768 = vmatprep.subr.mxu1 %v2090_v0 }
  0x6a   :  { %1742 = vmatpush3.msra.mxu0 %v2206_v40  ;;  %1769 = vmatpush3.msra.mxu1 %v2132_v5 }
  0x6b   :  { %1743 = vmatprep.subr.mxu0 %v2090_v0  ;;  %1770 = vmatprep.subr.mxu1 %v2090_v0 }
  0x6c   :  { %1744 = vmatpush3.msra.mxu0 %v2221_v46  ;;  %1771 = vmatpush3.msra.mxu1 %v2134_v6 }
  0x6d   :  { %1745 = vmatprep.subr.mxu0 %v2090_v0  ;;  %1772 = vmatprep.subr.mxu1 %v2090_v0 }
  0x6e   :  { %1746 = vmatpush3.msra.mxu0 %v2239_v53  ;;  %1773 = vmatpush3.msra.mxu1 %v2136_v10 }
  0x6f   :  { %1747 = vmatprep.subr.mxu0 %v2090_v0  ;;  %1774 = vmatprep.subr.mxu1 %v2090_v0 }
  0x70   :  { %1748 = vmatpush3.msra.mxu0 %v2249_v57  ;;  %1775 = vmatpush3.msra.mxu1 %v2138_v11 }
  0x71   :  { %1749 = vmatprep.subr.mxu0 %v2090_v0  ;;  %1776 = vmatprep.subr.mxu1 %v2090_v0 }
  0x72   :  { %1750 = vmatpush3.msra.mxu0 %v2274_v3  ;;  %1777 = vmatpush3.msra.mxu1 %v2140_v12 }
  0x73   :  { %1751 = vmatprep.subr.mxu0 %v2090_v0  ;;  %1778 = vmatprep.subr.mxu1 %v2090_v0 }
  0x74   :  { %1752 = vmatpush3.msra.mxu0 %v2290_v19  ;;  %1779 = vmatpush3.msra.mxu1 %v2149_v17 }
  0x75   :  { %1753 = vmatprep.subr.mxu0 %v2090_v0  ;;  %1780 = vmatprep.subr.mxu1 %v2090_v0 }
  0x76   :  { %1754 = vmatpush3.msra.mxu0 %v2310_v39  ;;  %1781 = vmatpush3.msra.mxu1 %v2171_v25 }
  0x77   :  { %1755 = vmatprep.subr.mxu0 %v2090_v0  ;;  %1782 = vmatprep.subr.mxu1 %v2090_v0 }
  0x78   :  { %1756 = vmatpush3.msra.mxu0 %v2325_v58  ;;  %1783 = vmatpush3.msra.mxu1 %v2177_v28 }
  0x79   :  { %1757 = vmatprep.subr.mxu0 %v2090_v0  ;;  %1784 = vmatprep.subr.mxu1 %v2090_v0 }
  0x7a   :  { %1758 = vmatpush3.msra.mxu0 %v2339_v52  ;;  %1785 = vmatpush3.msra.mxu1 %v2196_v35 }
  0x7b   :  { %1759 = vmatprep.subr.mxu0 %v2090_v0  ;;  %1786 = vmatprep.subr.mxu1 %v2090_v0 }
  0x7c   :  { %1760 = vmatpush3.msra.mxu0 %v2356_v7  ;;  %1787 = vmatpush3.msra.mxu1 %v2218_v45 }
  0x7d   :  { %1761 = vmatprep.subr.mxu0 %v2090_v0  ;;  %1788 = vmatprep.subr.mxu1 %v2090_v0 }
  0x7e   :  { %1762 = vmatpush3.msra.mxu0 %v2367_v36  ;;  %1763 = vmatprep.mubr.msk.f32.mxu0 %vm2091_vm0, %v2090_v0 }
  0x7f   :  { %1789 = vmatpush3.msra.mxu1 %v2228_v48  ;;  %1764 = vmatmul.mubr.f32.vlgmr.msra.gmra.mxu0 %v2261_v62 }
  0x80   :  { %1790 = vmatprep.subr.mxu1 %v2090_v0  ;;  %1801 = vmatprep.subr.mxu0 %v2090_v0 }
  0x81   :  { %1791 = vmatpush3.msra.mxu1 %v2255_v59  ;;  %1802 = vmatpush3.msra.mxu0 %v2130_v4 }
  0x82   :  { %1792 = vmatprep.subr.mxu1 %v2090_v0  ;;  %1803 = vmatprep.subr.mxu0 %v2090_v0 }
  0x83   :  { %1793 = vmatpush3.msra.mxu1 %v2265_v63  ;;  %1804 = vmatpush3.msra.mxu0 %v2132_v5 }
  0x84   :  { %1794 = vmatprep.subr.mxu1 %v2090_v0  ;;  %1805 = vmatprep.subr.mxu0 %v2090_v0 }
  0x85   :  { %1795 = vmatpush3.msra.mxu1 %v2283_v13  ;;  %1806 = vmatpush3.msra.mxu0 %v2134_v6 }
  0x86   :  { %1796 = vmatprep.subr.mxu1 %v2090_v0  ;;  %1807 = vmatprep.subr.mxu0 %v2090_v0 }
  0x87   :  { %1797 = vmatpush3.msra.mxu1 %v2301_v32  ;;  %1798 = vmatprep.mubr.msk.f32.mxu1 %vm2091_vm0, %v2090_v0 }
  0x88   :  { %1808 = vmatpush3.msra.mxu0 %v2136_v10  ;;  %1799 = vmatmul.mubr.f32.vlgmr.msra.gmra.mxu1 %v2261_v62  ;;  %v2793_v62 = vld [vmem:[#allocation11_spill] sm:$0xff] }
  0x89   :  { %1809 = vmatprep.subr.mxu0 %v2090_v0  ;;  %1836 = vmatprep.subr.mxu1 %v2090_v0 }
  0x8a   :  { %1810 = vmatpush3.msra.mxu0 %v2138_v11  ;;  %1837 = vmatpush3.msra.mxu1 %v2199_v37  ;;  %v2561_v37 = vand.u32 4294901760, %v702_v56 }
  0x8b   :  { %1811 = vmatprep.subr.mxu0 %v2090_v0  ;;  %1838 = vmatprep.subr.mxu1 %v2090_v0 }
  0x8c   :  { %1812 = vmatpush3.msra.mxu0 %v2140_v12  ;;  %1839 = vmatpush3.msra.mxu1 %v2201_v38  ;;  %v2795_v38 = vld [vmem:[#allocation13_spill] sm:$0xff]  ;;  %v2572_v42 = vsub.f32 %v702_v56, %v2561_v37  ;;  %v2798_v56 = vld [vmem:[#allocation16_spill] sm:$0xff] }
  0x8d   :  { %1813 = vmatprep.subr.mxu0 %v2090_v0  ;;  %1840 = vmatprep.subr.mxu1 %v2090_v0 }
  0x8e   :  { %1814 = vmatpush3.msra.mxu0 %v2149_v17  ;;  %1841 = vmatpush3.msra.mxu1 %v2793_v62  ;;  %v786_v62 = vand.u32 4294901760, %v2572_v42 }
  0x8f   :  { %1815 = vmatprep.subr.mxu0 %v2090_v0  ;;  %1842 = vmatprep.subr.mxu1 %v2090_v0 }
  0x90   :  { %1816 = vmatpush3.msra.mxu0 %v2171_v25  ;;  %1843 = vmatpush3.msra.mxu1 %v2794_v26  ;;  %v2799_v26 = vld [vmem:[#allocation17_spill] sm:$0xff] }
  0x91   :  { %1817 = vmatprep.subr.mxu0 %v2090_v0  ;;  %1844 = vmatprep.subr.mxu1 %v2090_v0 }
  0x92   :  { %1818 = vmatpush3.msra.mxu0 %v2177_v28  ;;  %1845 = vmatpush3.msra.mxu1 %v2795_v38  ;;  %v787_v38 = vsub.f32 %v2572_v42, %v786_v62 }
  0x93   :  { %1819 = vmatprep.subr.mxu0 %v2090_v0  ;;  %1846 = vmatprep.subr.mxu1 %v2090_v0 }
  0x94   :  { %1820 = vmatpush3.msra.mxu0 %v2196_v35  ;;  %1847 = vmatpush3.msra.mxu1 %v2796_v9  ;;  %v2800_v9 = vld [vmem:[#allocation18_spill] sm:$0xff] }
  0x95   :  { %1821 = vmatprep.subr.mxu0 %v2090_v0  ;;  %1848 = vmatprep.subr.mxu1 %v2090_v0 }
  0x96   :  { %1822 = vmatpush3.msra.mxu0 %v2218_v45  ;;  %1849 = vmatpush3.msra.mxu1 %v2797_v44  ;;  %v788_v44 = vand.u32 4294901760, %v787_v38 }
  0x97   :  { %1823 = vmatprep.subr.mxu0 %v2090_v0  ;;  %1850 = vmatprep.subr.mxu1 %v2090_v0 }
  0x98   :  { %1824 = vmatpush3.msra.mxu0 %v2228_v48  ;;  %1851 = vmatpush3.msra.mxu1 %v2798_v56 }
  0x99   :  { %1825 = vmatprep.subr.mxu0 %v2090_v0  ;;  %1852 = vmatprep.subr.mxu1 %v2090_v0 }
  0x9a   :  { %1826 = vmatpush3.msra.mxu0 %v2255_v59  ;;  %1853 = vmatpush3.msra.mxu1 %v2799_v26 }
  0x9b   :  { %1827 = vmatprep.subr.mxu0 %v2090_v0  ;;  %1854 = vmatprep.subr.mxu1 %v2090_v0 }
  0x9c   :  { %1828 = vmatpush3.msra.mxu0 %v2265_v63  ;;  %1855 = vmatpush3.msra.mxu1 %v2800_v9 }
  0x9d   :  { %1829 = vmatprep.subr.mxu0 %v2090_v0  ;;  %1856 = vmatprep.subr.mxu1 %v2090_v0 }
  0x9e   :  { %1830 = vmatpush3.msra.mxu0 %v2283_v13  ;;  %1857 = vmatpush3.msra.mxu1 %v2348_v60 }
  0x9f   :  { %1831 = vmatprep.subr.mxu0 %v2090_v0  ;;  %1858 = vmatprep.subr.mxu1 %v2090_v0 }
  0xa0   :  { %1832 = vmatpush3.msra.mxu0 %v2301_v32  ;;  %1859 = vmatpush3.msra.mxu1 %v2362_v49 }
  0xa1   :  { %1833 = vmatprep.mubr.msk.f32.mxu0 %vm2091_vm0, %v2090_v0  ;;  %1860 = vmatprep.subr.mxu1 %v2090_v0 }
  0xa2   :  { %1871 = vmatprep.subr.mxu0 %v2090_v0  ;;  %1834 = vmatmul.mubr.f32.vlgmr.msra.gmra.mxu0 %v788_v44 }
  0xa3   :  { %1861 = vmatpush3.msra.mxu1 %v2373_v51  ;;  %1872 = vmatpush3.msra.mxu0 %v2144_v15 }
  0xa4   :  { %1862 = vmatprep.subr.mxu1 %v2090_v0  ;;  %1873 = vmatprep.subr.mxu0 %v2090_v0 }
  0xa5   :  { %1863 = vmatpush3.msra.mxu1 %v2381_v2  ;;  %1874 = vmatpush3.msra.mxu0 %v2147_v16 }
  0xa6   :  { %1864 = vmatprep.subr.mxu1 %v2090_v0  ;;  %1875 = vmatprep.subr.mxu0 %v2090_v0 }
  0xa7   :  { %1865 = vmatpush3.msra.mxu1 %v2388_v1  ;;  %1876 = vmatpush3.msra.mxu0 %v2152_v18 }
  0xa8   :  { %1866 = vmatprep.subr.mxu1 %v2090_v0  ;;  %1877 = vmatprep.subr.mxu0 %v2090_v0 }
  0xa9   :  { %1867 = vmatpush3.msra.mxu1 %v2394_v33  ;;  %1868 = vmatprep.mubr.msk.f32.mxu1 %vm2091_vm0, %v2090_v0 }
  0xaa   :  { %1878 = vmatpush3.msra.mxu0 %v2156_v20  ;;  %1869 = vmatmul.mubr.f32.vlgmr.msra.gmra.mxu1 %v2561_v37 }
  0xab   :  { %1879 = vmatprep.subr.mxu0 %v2090_v0  ;;  %1906 = vmatprep.subr.mxu1 %v2090_v0 }
  0xac   :  { %1880 = vmatpush3.msra.mxu0 %v2159_v21  ;;  %1907 = vmatpush3.msra.mxu1 %v2130_v4 }
  0xad   :  { %1881 = vmatprep.subr.mxu0 %v2090_v0  ;;  %1908 = vmatprep.subr.mxu1 %v2090_v0 }
  0xae   :  { %1882 = vmatpush3.msra.mxu0 %v2183_v30  ;;  %1909 = vmatpush3.msra.mxu1 %v2132_v5 }
  0xaf   :  { %1883 = vmatprep.subr.mxu0 %v2090_v0  ;;  %1910 = vmatprep.subr.mxu1 %v2090_v0 }
  0xb0   :  { %1884 = vmatpush3.msra.mxu0 %v2193_v34  ;;  %1911 = vmatpush3.msra.mxu1 %v2134_v6 }
  0xb1   :  { %1885 = vmatprep.subr.mxu0 %v2090_v0  ;;  %1912 = vmatprep.subr.mxu1 %v2090_v0 }
  0xb2   :  { %1886 = vmatpush3.msra.mxu0 %v2212_v43  ;;  %1913 = vmatpush3.msra.mxu1 %v2136_v10 }
  0xb3   :  { %1887 = vmatprep.subr.mxu0 %v2090_v0  ;;  %1914 = vmatprep.subr.mxu1 %v2090_v0 }
  0xb4   :  { %1888 = vmatpush3.msra.mxu0 %v2224_v47  ;;  %1915 = vmatpush3.msra.mxu1 %v2138_v11 }
  0xb5   :  { %1889 = vmatprep.subr.mxu0 %v2090_v0  ;;  %1916 = vmatprep.subr.mxu1 %v2090_v0 }
  0xb6   :  { %1890 = vmatpush3.msra.mxu0 %v2242_v55  ;;  %1917 = vmatpush3.msra.mxu1 %v2140_v12 }
  0xb7   :  { %1891 = vmatprep.subr.mxu0 %v2090_v0  ;;  %1918 = vmatprep.subr.mxu1 %v2090_v0 }
  0xb8   :  { %1892 = vmatpush3.msra.mxu0 %v2258_v61  ;;  %1919 = vmatpush3.msra.mxu1 %v2149_v17 }
  0xb9   :  { %1893 = vmatprep.subr.mxu0 %v2090_v0  ;;  %1920 = vmatprep.subr.mxu1 %v2090_v0 }
  0xba   :  { %1894 = vmatpush3.msra.mxu0 %v2277_v8  ;;  %1921 = vmatpush3.msra.mxu1 %v2171_v25 }
  0xbb   :  { %1895 = vmatprep.subr.mxu0 %v2090_v0  ;;  %1922 = vmatprep.subr.mxu1 %v2090_v0 }
  0xbc   :  { %1896 = vmatpush3.msra.mxu0 %v2297_v31  ;;  %1923 = vmatpush3.msra.mxu1 %v2177_v28  ;;  %v1385_v31 = vld [vmem:[%s2771_s1] ss:$0 sm:$0xff] }
  0xbd   :  { %1897 = vmatprep.subr.mxu0 %v2090_v0  ;;  %1924 = vmatprep.subr.mxu1 %v2090_v0 }
  0xbe   :  { %1898 = vmatpush3.msra.mxu0 %v2313_v41  ;;  %1925 = vmatpush3.msra.mxu1 %v2196_v35 }
  0xbf   :  { %1899 = vmatprep.subr.mxu0 %v2090_v0  ;;  %1926 = vmatprep.subr.mxu1 %v2090_v0 }
  0xc0   :  { %1900 = vmatpush3.msra.mxu0 %v2328_v54  ;;  %1927 = vmatpush3.msra.mxu1 %v2218_v45 }
  0xc1   :  { %1901 = vmatprep.subr.mxu0 %v2090_v0  ;;  %1928 = vmatprep.subr.mxu1 %v2090_v0 }
  0xc2   :  { %1902 = vmatpush3.msra.mxu0 %v2342_v14  ;;  %1903 = vmatprep.mubr.msk.f32.mxu0 %vm2091_vm0, %v2090_v0 }
  0xc3   :  { %1929 = vmatpush3.msra.mxu1 %v2228_v48  ;;  %1904 = vmatmul.mubr.f32.vlgmr.msra.gmra.mxu0 %v2572_v42 }
  0xc4   :  { %1930 = vmatprep.subr.mxu1 %v2090_v0  ;;  %1941 = vmatprep.subr.mxu0 %v2090_v0 }
  0xc5   :  { %1931 = vmatpush3.msra.mxu1 %v2255_v59  ;;  %1942 = vmatpush3.msra.mxu0 %v2163_v22 }
  0xc6   :  { %1932 = vmatprep.subr.mxu1 %v2090_v0  ;;  %1943 = vmatprep.subr.mxu0 %v2090_v0 }
  0xc7   :  { %1933 = vmatpush3.msra.mxu1 %v2265_v63  ;;  %1944 = vmatpush3.msra.mxu0 %v2166_v23 }
  0xc8   :  { %1934 = vmatprep.subr.mxu1 %v2090_v0  ;;  %1945 = vmatprep.subr.mxu0 %v2090_v0 }
  0xc9   :  { %1935 = vmatpush3.msra.mxu1 %v2283_v13  ;;  %1946 = vmatpush3.msra.mxu0 %v2169_v24 }
  0xca   :  { %1936 = vmatprep.subr.mxu1 %v2090_v0  ;;  %1947 = vmatprep.subr.mxu0 %v2090_v0 }
  0xcb   :  { %1937 = vmatpush3.msra.mxu1 %v2301_v32  ;;  %1938 = vmatprep.mubr.msk.f32.mxu1 %vm2091_vm0, %v2090_v0 }
  0xcc   :  { %1948 = vmatpush3.msra.mxu0 %v2175_v27  ;;  %1939 = vmatmul.mubr.f32.vlgmr.msra.gmra.mxu1 %v786_v62 }
  0xcd   :  { %1949 = vmatprep.subr.mxu0 %v2090_v0  ;;  %1976 = vmatprep.subr.mxu1 %v2090_v0 }
  0xce   :  { %1950 = vmatpush3.msra.mxu0 %v2180_v29  ;;  %1977 = vmatpush3.msra.mxu1 %v2130_v4 }
  0xcf   :  { %1951 = vmatprep.subr.mxu0 %v2090_v0  ;;  %1978 = vmatprep.subr.mxu1 %v2090_v0 }
  0xd0   :  { %1952 = vmatpush3.msra.mxu0 %v2206_v40  ;;  %1979 = vmatpush3.msra.mxu1 %v2132_v5 }
  0xd1   :  { %1953 = vmatprep.subr.mxu0 %v2090_v0  ;;  %1980 = vmatprep.subr.mxu1 %v2090_v0 }
  0xd2   :  { %1954 = vmatpush3.msra.mxu0 %v2221_v46  ;;  %1981 = vmatpush3.msra.mxu1 %v2134_v6 }
  0xd3   :  { %1955 = vmatprep.subr.mxu0 %v2090_v0  ;;  %1982 = vmatprep.subr.mxu1 %v2090_v0 }
  0xd4   :  { %1956 = vmatpush3.msra.mxu0 %v2239_v53  ;;  %1983 = vmatpush3.msra.mxu1 %v2136_v10 }
  0xd5   :  { %1957 = vmatprep.subr.mxu0 %v2090_v0  ;;  %1984 = vmatprep.subr.mxu1 %v2090_v0 }
  0xd6   :  { %1958 = vmatpush3.msra.mxu0 %v2249_v57  ;;  %1985 = vmatpush3.msra.mxu1 %v2138_v11 }
  0xd7   :  { %1959 = vmatprep.subr.mxu0 %v2090_v0  ;;  %1986 = vmatprep.subr.mxu1 %v2090_v0 }
  0xd8   :  { %1960 = vmatpush3.msra.mxu0 %v2274_v3  ;;  %1987 = vmatpush3.msra.mxu1 %v2140_v12 }
  0xd9   :  { %1961 = vmatprep.subr.mxu0 %v2090_v0  ;;  %1988 = vmatprep.subr.mxu1 %v2090_v0 }
  0xda   :  { %1962 = vmatpush3.msra.mxu0 %v2290_v19  ;;  %1989 = vmatpush3.msra.mxu1 %v2149_v17 }
  0xdb   :  { %1963 = vmatprep.subr.mxu0 %v2090_v0  ;;  %1990 = vmatprep.subr.mxu1 %v2090_v0 }
  0xdc   :  { %1964 = vmatpush3.msra.mxu0 %v2310_v39  ;;  %1991 = vmatpush3.msra.mxu1 %v2171_v25  ;;  %v1386_v39 = vld [vmem:[%s2772_s2] ss:$0 sm:$0xff] }
  0xdd   :  { %1965 = vmatprep.subr.mxu0 %v2090_v0  ;;  %1992 = vmatprep.subr.mxu1 %v2090_v0 }
  0xde   :  { %1966 = vmatpush3.msra.mxu0 %v2325_v58  ;;  %1993 = vmatpush3.msra.mxu1 %v2177_v28 }
  0xdf   :  { %1967 = vmatprep.subr.mxu0 %v2090_v0  ;;  %1994 = vmatprep.subr.mxu1 %v2090_v0 }
  0xe0   :  { %1968 = vmatpush3.msra.mxu0 %v2339_v52  ;;  %1995 = vmatpush3.msra.mxu1 %v2196_v35 }
  0xe1   :  { %1969 = vmatprep.subr.mxu0 %v2090_v0  ;;  %1996 = vmatprep.subr.mxu1 %v2090_v0 }
  0xe2   :  { %1970 = vmatpush3.msra.mxu0 %v2356_v7  ;;  %1997 = vmatpush3.msra.mxu1 %v2218_v45 }
  0xe3   :  { %1971 = vmatprep.subr.mxu0 %v2090_v0  ;;  %1998 = vmatprep.subr.mxu1 %v2090_v0 }
  0xe4   :  { %1972 = vmatpush3.msra.mxu0 %v2367_v36  ;;  %1973 = vmatprep.mubr.msk.f32.mxu0 %vm2091_vm0, %v2090_v0 }
  0xe5   :  { %1999 = vmatpush3.msra.mxu1 %v2228_v48  ;;  %1974 = vmatmul.mubr.f32.vlgmr.msra.gmra.mxu0 %v2561_v37 }
  0xe6   :  { %2000 = vmatprep.subr.mxu1 %v2090_v0  ;;  %2008 = vmatprep.mubr.msk.f32.mxu1 %vm2091_vm0, %v2090_v0 }
  0xe7   :  { %2001 = vmatpush3.msra.mxu1 %v2255_v59 }
  0xe8   :  { %2002 = vmatprep.subr.mxu1 %v2090_v0 }
  0xe9   :  { %2003 = vmatpush3.msra.mxu1 %v2265_v63 }
  0xea   :  { %2004 = vmatprep.subr.mxu1 %v2090_v0 }
  0xeb   :  { %2005 = vmatpush3.msra.mxu1 %v2283_v13 }
  0xec   :  { %2006 = vmatprep.subr.mxu1 %v2090_v0 }
  0xed   :  { %2007 = vmatpush3.msra.mxu1 %v2301_v32 }
  0xee   :  { %2009 = vmatmul.mubr.f32.vlgmr.msra.gmra.mxu1 %v2561_v37 }
  0xfd   :  { %v148_v4 = vpop.f32.mrf.mxu0 }
  0xff   :  { %v1625_v5 = vpop.f32.mrf.mxu0 }
 0x104   :  { %v299_v6 = vpop.f32.mrf.mxu1 }
 0x105   :  { %v300_v10 = vadd.f32 %v299_v6, %v148_v4 }
 0x106   :  { %v1660_v11 = vpop.f32.mrf.mxu1 }
 0x11d   :  { %v403_v12 = vpop.f32.mrf.mxu0 }
 0x11e   :  { %v404_v15 = vadd.f32 %v403_v12, %v300_v10 }
 0x11f   :  { %v1695_v16 = vpop.f32.mrf.mxu0 }
 0x126   :  { %v492_v17 = vpop.f32.mrf.mxu1 }
 0x127   :  { %v493_v18 = vadd.f32 %v492_v17, %v404_v15 }
 0x128   :  { %v1730_v20 = vpop.f32.mrf.mxu1 }
 0x13f   :  { %v611_v21 = vpop.f32.mrf.mxu0 }
 0x140   :  { %v612_v22 = vadd.f32 %v611_v21, %v493_v18 }
 0x141   :  { %v1765_v23 = vpop.f32.mrf.mxu0 }
 0x148   :  { %v698_v24 = vpop.f32.mrf.mxu1 }
 0x149   :  { %v699_v0 = vadd.f32 %v698_v24, %v612_v22 }
 0x14a   :  { %v1800_v25 = vpop.f32.mrf.mxu1 }
 0x14b   :  { %v1344_v53 = vmul.f32 0.03125, %v699_v0 }
 0x14d   :  { %v1346_v63 = vmul.f32 %v1344_v53, %v1344_v53  ;;  %v1348_v14 = vsub.f32 %v2230_v50, %v1344_v53 }
 0x162   :  { %v790_v27 = vpop.f32.mrf.mxu0 }
 0x164   :  { %v1835_v28 = vpop.f32.mrf.mxu0 }
 0x16a   :  { %v941_v29 = vpop.f32.mrf.mxu1 }
 0x16b   :  { %v942_v46 = vadd.f32 %v941_v29, %v790_v27 }
 0x16c   :  { %v1870_v30 = vpop.f32.mrf.mxu1 }
 0x183   :  { %v1045_v34 = vpop.f32.mrf.mxu0 }
 0x184   :  { %v1046_v48 = vadd.f32 %v1045_v34, %v942_v46 }
 0x185   :  { %v1905_v35 = vpop.f32.mrf.mxu0 }
 0x18c   :  { %v1134_v40 = vpop.f32.mrf.mxu1 }
 0x18d   :  { %v1135_v51 = vadd.f32 %v1134_v40, %v1046_v48 }
 0x18e   :  { %v1940_v43 = vpop.f32.mrf.mxu1 }
 0x1a5   :  { %v1253_v45 = vpop.f32.mrf.mxu0 }
 0x1a6   :  { %v1254_v55 = vadd.f32 %v1253_v45, %v1135_v51 }
 0x1a7   :  { %v1975_v47 = vpop.f32.mrf.mxu0 }
 0x1ae   :  { %v1340_v57 = vpop.f32.mrf.mxu1 }
 0x1af   :  { %v1341_v59 = vadd.f32 %v1340_v57, %v1254_v55 }
 0x1b0   :  { %v2010_v61 = vpop.f32.mrf.mxu1 }
 0x1b1   :  { %v1345_v3 = vmul.f32 0.03125, %v1341_v59 }
 0x1b3   :  { %v1347_v8 = vsub.f32 %v1345_v3, %v1346_v63 }
 0x1b5   :  { %v1349_v13 = vadd.f32 1e-05, %v1347_v8 }
 0x1b7   :  { %2018 = vrsqrt.f32 %v1349_v13 }
 0x1c4   :  { %v2019_v19 = vpop.eup %2018 }
 0x1c5   :  { %v1351_v32 = vmul.f32 %v2019_v19, %v1348_v14 }
 0x1c7   :  { %v1359_v41 = vmul.f32 %v1385_v31, %v1351_v32 }
 0x1c9   :  { %v1367_v52 = vadd.f32 %v1386_v39, %v1359_v41 }
 0x1cb   :  { %1368 = vst [vmem:[#allocation7] sm:$0xf] %v1367_v52 }
 0x1cc   :  { %2071 = shalt.err (!%p2068_p0)
}
 0x1cd   :  { %1378 = dma.vmem_to_hbm [thread:$0]  %s1376_s30, 64, %s2774_s4, [#allocation4]  }
 0x1ce   :  { %2084 = dma.done.wait [#allocation4], 64  }
 0x1cf   :  { %2085 = vsyncadd [#allocation4], 4294967232 }
 0x1d0   :  { %1382 = vsyncpa [#allocation3], 1 }
 0x1d1   :  { %1383 = vsyncpa [#allocation6], 1 }
 0x1d2   :  { %1384 = vsyncpa [#allocation4], 1 }

</bundles_post_ra>
